<compile_context>
chip_gen: v7x
topology: tpu7x:2x2x1
jax: 0.10.0
libtpu: 0.0.40
codegen_flags: <defaults>
</compile_context>

<pallas_src>
import jax
import jax.numpy as jnp
from jax.experimental import pallas as pl
from jax.experimental.pallas import tpu as pltpu


def _where_kernel(c_ref, x_ref, y_ref, o_ref):
    # Input tiles keep size-1 dims wherever the operand is broadcast;
    # jnp.where broadcasts them against the full output tile inside VMEM
    # (vreg broadcasts -> no extra HBM traffic).
    o_ref[...] = jnp.where(c_ref[...] != 0, x_ref[...], y_ref[...]).astype(o_ref.dtype)


def _pick_sublane_block(dim, cap):
    """Largest divisor of `dim` <= cap that is a multiple of 32 (int8 vreg
    packing) or 8 (f32 packing); falls back to the full dim (always legal)."""
    cap = max(1, min(dim, cap))
    for quantum in (32, 8):
        start = cap - cap % quantum
        for d in range(start, 0, -quantum):
            if dim % d == 0:
                return d
    return dim  # full dim -> always a legal block size


def _pick_any_block(dim, cap):
    """Largest divisor of `dim` that is <= cap (no alignment requirement)."""
    cap = max(1, min(dim, cap))
    for d in range(cap, 0, -1):
        if dim % d == 0:
            return d
    return 1


def _make_in_spec(shape, out_blocks):
    rank = len(shape)
    # Block size 1 along broadcast (size-1) dims, output block size elsewhere.
    blocks = tuple(1 if shape[d] == 1 else out_blocks[d] for d in range(rank))
    use = tuple(shape[d] > 1 for d in range(rank - 1))

    def index_map(*g):
        return tuple(g[d] if use[d] else 0 for d in range(rank - 1)) + (0,)

    return pl.BlockSpec(blocks, index_map)


def pallas_where(condition, x, y, *, vmem_budget_bytes=8 * 1024 * 1024):
    out_shape = jnp.broadcast_shapes(condition.shape, x.shape, y.shape)
    out_dtype = jnp.result_type(x.dtype, y.dtype)

    # Work in >= 2-D so the last two dims map to (sublane, lane).
    work_shape = tuple(out_shape)
    if len(work_shape) < 2:
        work_shape = (1,) * (2 - len(work_shape)) + work_shape
    rank = len(work_shape)

    def normalize(a, dtype):
        a = a.astype(dtype)
        return a.reshape((1,) * (rank - a.ndim) + a.shape)  # metadata-only reshape

    c = normalize(condition, jnp.int8)   # 1 B/elem mask; kernel tests != 0
    xs = normalize(x, out_dtype)
    ys = normalize(y, out_dtype)

    L = work_shape[-1]
    H = work_shape[-2]

    # Conservative tile sizing: ~13 B/elem across (int8 cond + x + y + out),
    # double-buffered, with the lane dim padded to 128.  Fits comfortably in
    # v5e's 16 MiB scoped-VMEM default and v7x's 64 MiB physical VMEM.
    lane_pad = ((L + 127) // 128) * 128
    max_rows = max(8, vmem_budget_bytes // (2 * 13 * lane_pad))

    bh = _pick_sublane_block(H, max_rows)
    cb = 1
    if rank >= 3:
        cb = _pick_any_block(work_shape[-3], max(1, max_rows // max(bh, 8)))

    out_blocks = [1] * rank
    out_blocks[-1] = L        # full lane dim: legal for every operand (L or 1)
    out_blocks[-2] = bh       # divisor of H, multiple of 32/8 or full dim
    if rank >= 3:
        out_blocks[-3] = cb
    out_blocks = tuple(out_blocks)

    grid = tuple(work_shape[d] // out_blocks[d] for d in range(rank - 1))

    out = pl.pallas_call(
        _where_kernel,
        out_shape=jax.ShapeDtypeStruct(work_shape, out_dtype),
        grid=grid,
        in_specs=[
            _make_in_spec(c.shape, out_blocks),
            _make_in_spec(xs.shape, out_blocks),
            _make_in_spec(ys.shape, out_blocks),
        ],
        out_specs=pl.BlockSpec(out_blocks, lambda *g: tuple(g) + (0,)),
        compiler_params=pltpu.CompilerParams(
            dimension_semantics=("parallel",) * len(grid)
        ),
    )(c, xs, ys)

    return out.reshape(out_shape)


if __name__ == "__main__":
    key = jax.random.PRNGKey(0)
    k1, k2, k3 = jax.random.split(key, 3)

    # Same broadcasting pattern as the original test module:
    # condition (2,4,16,16), x (2,1,16,16), y (1,4,16,1).
    condition = jax.random.bernoulli(k1, p=0.5, shape=(2, 4, 16, 16))
    x = jax.random.normal(k2, (2, 1, 16, 16), dtype=jnp.float32)
    y = jax.random.normal(k3, (1, 4, 16, 1), dtype=jnp.float32)

    out = pallas_where(condition, x, y)
    out = jax.block_until_ready(out)

    # Correctness check against pure-JAX reference (same semantics as torch.where)
    ref = jnp.where(condition, x, y)
    assert out.shape == ref.shape, (out.shape, ref.shape)
    assert out.dtype == ref.dtype, (out.dtype, ref.dtype)
    assert jnp.array_equal(out, ref), "mismatch vs jnp.where reference"

    print("KERNEL_OK")
</pallas_src>

<mosaic_0001>
module attributes {stable_mosaic.version = 11 : i64} {
  func.func @_where_kernel(%arg0: i32, %arg1: i32, %arg2: i32, %arg3: memref<1x4x16x16xi8, #tpu.memory_space<vmem>>, %arg4: memref<1x1x16x16xf32, #tpu.memory_space<vmem>>, %arg5: memref<1x4x16x1xf32, #tpu.memory_space<vmem>>, %arg6: memref<1x4x16x16xf32, #tpu.memory_space<vmem>>) attributes {dimension_semantics = [#tpu.dimension_semantics<parallel>, #tpu.dimension_semantics<parallel>, #tpu.dimension_semantics<parallel>], iteration_bounds = array<i64: 2, 1, 1>, scalar_prefetch = 0 : i64, scratch_operands = 0 : i64, tpu.core_type = #tpu.core_type<tc>, window_params = [{transform_indices = @transform_0, window_bounds = array<i64: 1, 4, 16, 16>}, {transform_indices = @transform_1, window_bounds = array<i64: 1, 1, 16, 16>}, {transform_indices = @transform_2, window_bounds = array<i64: 1, 4, 16, 1>}, {transform_indices = @transform_3, window_bounds = array<i64: 1, 4, 16, 16>}]} {
    %c0 = arith.constant 0 : index
    %c0_0 = arith.constant 0 : index
    %c0_1 = arith.constant 0 : index
    %c0_2 = arith.constant 0 : index
    %0 = vector.load %arg3[%c0, %c0_0, %c0_1, %c0_2] : memref<1x4x16x16xi8, #tpu.memory_space<vmem>>, vector<1x4x16x16xi8>
    %c0_i8 = arith.constant 0 : i8
    %1 = vector.broadcast %c0_i8 : i8 to vector<1x4x16x16xi8>
    %2 = arith.cmpi ne, %0, %1 : vector<1x4x16x16xi8>
    %c0_3 = arith.constant 0 : index
    %c0_4 = arith.constant 0 : index
    %c0_5 = arith.constant 0 : index
    %c0_6 = arith.constant 0 : index
    %3 = vector.load %arg4[%c0_3, %c0_4, %c0_5, %c0_6] : memref<1x1x16x16xf32, #tpu.memory_space<vmem>>, vector<1x1x16x16xf32>
    %c0_7 = arith.constant 0 : index
    %c0_8 = arith.constant 0 : index
    %c0_9 = arith.constant 0 : index
    %c0_10 = arith.constant 0 : index
    %4 = vector.load %arg5[%c0_7, %c0_8, %c0_9, %c0_10] : memref<1x4x16x1xf32, #tpu.memory_space<vmem>>, vector<1x4x16x1xf32>
    %5 = vector.shape_cast %3 : vector<1x1x16x16xf32> to vector<1x1x16x16xf32>
    %6 = vector.broadcast %5 : vector<1x1x16x16xf32> to vector<1x4x16x16xf32>
    %7 = vector.shape_cast %4 : vector<1x4x16x1xf32> to vector<1x4x16x1xf32>
    %8 = vector.broadcast %7 : vector<1x4x16x1xf32> to vector<1x4x16x16xf32>
    %9 = arith.select %2, %6, %8 : vector<1x4x16x16xi1>, vector<1x4x16x16xf32>
    %c0_11 = arith.constant 0 : index
    %c0_12 = arith.constant 0 : index
    %c0_13 = arith.constant 0 : index
    %c0_14 = arith.constant 0 : index
    %10 = vector.load %arg6[%c0_11, %c0_12, %c0_13, %c0_14] : memref<1x4x16x16xf32, #tpu.memory_space<vmem>>, vector<1x4x16x16xf32>
    tpu.vector_store %arg6[%c0_11, %c0_12, %c0_13, %c0_14], %9 {strides = array<i32>} : memref<1x4x16x16xf32, #tpu.memory_space<vmem>>, vector<1x4x16x16xf32>,
    return
  }
  func.func @transform_0(%arg0: i32, %arg1: i32, %arg2: i32) -> (i32, i32, i32, i32) {
    %c0_i32 = arith.constant 0 : i32
    %c0_i32_0 = arith.constant 0 : i32
    return %arg0, %arg1, %arg2, %c0_i32 : i32, i32, i32, i32
  }
  func.func @transform_1(%arg0: i32, %arg1: i32, %arg2: i32) -> (i32, i32, i32, i32) {
    %c0_i32 = arith.constant 0 : i32
    %c0_i32_0 = arith.constant 0 : i32
    %c0_i32_1 = arith.constant 0 : i32
    return %arg0, %c0_i32, %arg2, %c0_i32_0 : i32, i32, i32, i32
  }
  func.func @transform_2(%arg0: i32, %arg1: i32, %arg2: i32) -> (i32, i32, i32, i32) {
    %c0_i32 = arith.constant 0 : i32
    %c0_i32_0 = arith.constant 0 : i32
    %c0_i32_1 = arith.constant 0 : i32
    return %c0_i32, %arg1, %arg2, %c0_i32_0 : i32, i32, i32, i32
  }
  func.func @transform_3(%arg0: i32, %arg1: i32, %arg2: i32) -> (i32, i32, i32, i32) {
    %c0_i32 = arith.constant 0 : i32
    %c0_i32_0 = arith.constant 0 : i32
    return %arg0, %arg1, %arg2, %c0_i32 : i32, i32, i32, i32
  }
}

</mosaic_0001>

<bundles_post_ra>
// kernel: tpu_custom_call.1
= control target key start
LH: loop header
LB: loop body
LE: loop exit
PB: predicated region body
PF: predicated region fallthrough
CT: control target
= control target key end

     0   :  { %8 = vsyncpa [#allocation3], 0  ;;  %s921_s0 = inlined_call_operand.vmem [shape: s8[2,4,16,16], index: 0, kind: input, shape index: {}]   ;;  %s922_s1 = inlined_call_operand.vmem [shape: f32[2,1,16,16], index: 1, kind: input, shape index: {}]   ;;  %s923_s2 = inlined_call_operand.vmem [shape: f32[1,4,16,1], index: 2, kind: input, shape index: {}]   ;;  %s924_s3 = inlined_call_operand.hbm [shape: f32[2,4,16,16], index: 3, kind: output, shape index: {}]  }
   0x1   :  { %10 = vsyncpa [#allocation3 + $0x1], 0  ;;  %s746_s12 = smov 0   ;;  %s748_s13 = smov 0  }
   0x2   :  { %s750_s14 = smov 0   ;;  %s752_s15 = smov 0  }
   0x3   :  { %s754_s16 = smov 0   ;;  %s756_s17 = smov 0  }
   0x4 LB: > { %s563_s18 = sadd.s32 4294967295, %s720_s17   ;;  %s564_s19 = sadd.s32 4294967294, %s720_s17   ;;  %s720_s17 = sphi %s756_s17, %s16_s17   ;;  %s716_s16 = sphi %s754_s16, %s931_s16   ;;  %s712_s15 = sphi %s752_s15, %s930_s15   ;;  %s708_s14 = sphi %s750_s14, %s929_s14   ;;  %s704_s13 = sphi %s748_s13, %s928_s13   ;;  %s700_s12 = sphi %s746_s12, %s927_s12  }
   0x5   : > { %s35_s20 = sadd.s32 1, %s716_s16  ;;  %s132_s21 = sadd.s32 1, %s708_s14 }
   0x6   : > { %p37_p0 = scmp.ge.s32.totalorder %s35_s20, 2  ;;  %p142_p1 = scmp.ne.s32.totalorder %s708_s14, %s704_s13 }
   0x7   : > { %p143_p2 = scmp.eq.s32.totalorder %s563_s18, 1  ;;  %p148_p3 = scmp.ne.s32.totalorder %s704_s13, %s700_s12 }
   0x8   : > { %s933_s20 = smov (%p37_p0, %s35_s20), 0  ;;  %p149_p5 = scmp.eq.s32.totalorder %s564_s19, 1 }
   0x9   : > { %p786_p4 = por %p143_p2, %p142_p1  ;;  %s125_s23 = ssub.s32 %s716_s16, %s933_s20 }
   0xa   : > { %p568_p6 = scmp.ge.s32.totalorder %s720_s17, 1  ;;  %p130_p7 = scmp.eq.s32.totalorder %s125_s23, 0 }
   0xb   : > { %p793_p8 = por %p149_p5, %p148_p3  ;;  %p214_p9 = scmp.lt.s32.totalorder %s720_s17, 3 }
   0xc   : > { %s799_s25 = scalar_select %p130_p7, %s708_s14, %s132_s21  }
   0xd   : > { %p215_p10 = pnand %p568_p6, %p214_p9 }
   0xe   : > { %v328_v0 = vld [vmem:[%s923_s2 + $0x10] sm:$0xff] (!%p215_p10)  ;;  %v326_v1 = vld [vmem:[%s923_s2] sm:$0xff] (!%p215_p10)  ;;  %v722_v2 = vmov (!%p215_p10), 0   ;;  %v329_v3 = vld [vmem:[%s923_s2 + $0x18] sm:$0xff] (!%p215_p10)  ;;  %p268_p11 = scmp.lt.s32.totalorder (!%p215_p10), %s712_s15, 1  ;;  %s263_s30 = sand.u32 (!%p215_p10), 1, %s704_s13  }
   0xf   : > { %218 = sbr.rel (%p215_p10) target bundleno = 172 (0xac), region = 32  ;;  %641 = vset.pattern.permute.xlu1 (!%p215_p10), %v722_v2  ;;  %640 = vset.pattern.permute.xlu0 (!%p215_p10), %v722_v2  ;;  %v327_v4 = vld [vmem:[%s923_s2 + $0x8] sm:$0xff] (!%p215_p10)  ;;  %v330_v6 = vld [vmem:[%s923_s2 + $0x20] sm:$0xff] (!%p215_p10)  ;;  %v333_v7 = vld [vmem:[%s923_s2 + $0x38] sm:$0xff] (!%p215_p10)  ;;  %s569_s7 = sshll.u32 (!%p215_p10), %s263_s30, 6  ;;  %vm406_vm8 = vcmask (!%p215_p10), 130048  }
  0x10   : > { %346 = vperm.xlu1 (!%p215_p10), %641, %v328_v0   ;;  %336 = vperm.xlu0 (!%p215_p10), %640, %v326_v1   ;;  %v331_v5 = vld [vmem:[%s923_s2 + $0x28] sm:$0xff] (!%p215_p10)  ;;  %v332_v8 = vld [vmem:[%s923_s2 + $0x30] sm:$0xff] (!%p215_p10)  ;;  %s844_s8 = scalar_lea.vmem (!%p215_p10), [#allocation2], %s569_s7  ;;  %s581_s9 = sshll.u32 (!%p215_p10), %s712_s15, 10 }
  0x11   : > { %s434_s10 = sshll.u32 (!%p215_p10), %s844_s8, 4  ;;  %s865_s19 = scalar_lea.hbm (!%p215_p10), %s924_s3, %s581_s9  ;;  %s867_s10 = int_to_ptr.vmem [resolvable:$true] %s434_s10 }
  0x12   : > { %s642_s21 = scalar_lea.vmem (!%p215_p10), %s867_s10, 1024 }
  0x13   : > { %p643_p12 = scmp.ne.s32.totalorder (!%p215_p10), %s867_s10, %s642_s21 }
  0x14   : > { %351 = vperm.xlu1 (!%p215_p10), %641, %v329_v3   ;;  %341 = vperm.xlu0 (!%p215_p10), %640, %v327_v4  }
  0x15   : > { %p644_p13 = pnand (!%p215_p10), %p643_p12, %p786_p4 }
  0x16   : > { %s269_s23 = scalar_select %p268_p11, %s712_s15, 1 }
  0x17   : > { %s875_s15 = scalar_lea.sflag [#allocation3], %s263_s30  ;;  %p645_p0 = pneg %p644_p13 }
  0x18   : > { %361 = vperm.xlu1 %641, %v331_v5   ;;  %356 = vperm.xlu0 %640, %v330_v6   ;;  %s579_s26 = sshll.u32 %s269_s23, 4  ;;  %s723_s23 = smov [#allocation2]  }
  0x19   : > { %s279_s29 = scalar_lea.vmem %s921_s0, %s579_s26  ;;  %s290_s6 = scalar_lea.vmem %s922_s1, %s579_s26 }
  0x1a   : > { %v310_v9 = vld [vmem:[%s279_s29 + $0x4] sm:$0x3]  ;;  %v308_v10 = vld [vmem:[%s279_s29] sm:$0x3]  ;;  %v311_v11 = vld [vmem:[%s279_s29 + $0x6] sm:$0x3] }
  0x1b   : > { %vm318_vm0 = vnez %v310_v9  ;;  %vm316_vm1 = vnez %v308_v10  ;;  %v309_v12 = vld [vmem:[%s279_s29 + $0x2] sm:$0x3]  ;;  %vm319_vm2 = vnez %v311_v11  ;;  %v313_v15 = vld [vmem:[%s279_s29 + $0xa] sm:$0x3]  ;;  %v312_v16 = vld [vmem:[%s279_s29 + $0x8] sm:$0x3] }
  0x1c   : > { %371 = vperm.xlu1 %641, %v333_v7   ;;  %366 = vperm.xlu0 %640, %v332_v8   ;;  %v376_v13 = vsel %vm318_vm0, 16843009, %v722_v2  ;;  %v374_v14 = vsel %vm316_vm1, 16843009, %v722_v2  ;;  %vm317_vm3 = vnez %v309_v12  ;;  %v377_v19 = vsel %vm319_vm2, 16843009, %v722_v2 }
  0x1d   : > { %v384_v17 = vunpack.c.0.s8 %v376_v13  ;;  %v382_v18 = vunpack.c.0.s8 %v374_v14  ;;  %v375_v20 = vsel %vm317_vm3, 16843009, %v722_v2  ;;  %vm321_vm4 = vnez %v313_v15  ;;  %v315_v21 = vld [vmem:[%s279_s29 + $0xe] sm:$0x3]  ;;  %v314_v22 = vld [vmem:[%s279_s29 + $0xc] sm:$0x3] }
  0x1e   : > { %vm320_vm5 = vnez %v312_v16  ;;  %v324_v23 = vld [vmem:[%s290_s6] sm:$0xff]  ;;  %v385_v24 = vunpack.c.0.s8 %v377_v19  ;;  %v383_v25 = vunpack.c.0.s8 %v375_v20  ;;  %v379_v26 = vsel %vm321_vm4, 16843009, %v722_v2  ;;  %v325_v32 = vld [vmem:[%s290_s6 + $0x8] sm:$0xff]  ;;  %s646_s26 = sshll.u32 %s723_s23, 4  ;;  %s647_s26 = int_to_ptr.vmem [resolvable:$false] %s646_s26 }
  0x1f   : > { %vm392_vm6 = vcmp.ne.s32.totalorder %v384_v17, 0  ;;  %vm390_vm7 = vcmp.ne.s32.totalorder %v382_v18, 0  ;;  %v378_v27 = vsel %vm320_vm5, 16843009, %v722_v2  ;;  %vm323_vm9 = vnez %v315_v21  ;;  %s648_s27 = scalar_lea.vmem %s647_s26, 2048  ;;  %p649_p1 = scmp.lt.s32.totalorder %s867_s10, %s647_s26 }
  0x20   : > { %vm322_vm10 = vnez %v314_v22  ;;  %vm393_vm11 = vcmp.ne.s32.totalorder %v385_v24, 0  ;;  %vm391_vm12 = vcmp.ne.s32.totalorder %v383_v25, 0  ;;  %v387_v33 = vunpack.c.0.s8 %v379_v26  ;;  %p650_p2 = scmp.lt.s32.totalorder %s648_s27, %s642_s21 }
  0x21   : > { %v386_v34 = vunpack.c.0.s8 %v378_v27  ;;  %v381_v35 = vsel %vm323_vm9, 16843009, %v722_v2  ;;  %v380_v36 = vsel %vm322_vm10, 16843009, %v722_v2 }
  0x22   : > { %vm395_vm13 = vcmp.ne.s32.totalorder %v387_v33, 0  ;;  %v389_v41 = vunpack.c.0.s8 %v381_v35  ;;  %v388_v42 = vunpack.c.0.s8 %v380_v36  ;;  %p651_p3 = por %p650_p2, %p649_p1 }
  0x23   : > { %vm394_vm14 = vcmp.ne.s32.totalorder %v386_v34, 0 }
  0x24   : > { %vm397_vm15 = vcmp.ne.s32.totalorder %v389_v41, 0  ;;  %vm396_vm0 = vcmp.ne.s32.totalorder %v388_v42, 0  ;;  %p652_p5 = pnand %p651_p3, %p645_p0 }
  0x8f   : > { %v347_v28 = vpop.permute.xlu1 %346  ;;  %v337_v29 = vpop.permute.xlu0 %336 }
  0x90   : > { %v400_v30 = vsel %vm392_vm6, %v324_v23, %v347_v28  ;;  %v398_v31 = vsel %vm390_vm7, %v324_v23, %v337_v29 }
  0x91   : > { %409 = vst.msk [vmem:[%s844_s8 + $0x10] sm:$0xff] %vm406_vm8, %v400_v30  ;;  %407 = vst.msk [vmem:[%s844_s8] sm:$0xff] %vm406_vm8, %v398_v31 }
  0x93   : > { %v352_v37 = vpop.permute.xlu1 %351  ;;  %v342_v38 = vpop.permute.xlu0 %341 }
  0x94   : > { %v401_v39 = vsel %vm393_vm11, %v325_v32, %v352_v37  ;;  %v399_v40 = vsel %vm391_vm12, %v325_v32, %v342_v38 }
  0x95   : > { %410 = vst.msk [vmem:[%s844_s8 + $0x18] sm:$0xff] %vm406_vm8, %v401_v39  ;;  %408 = vst.msk [vmem:[%s844_s8 + $0x8] sm:$0xff] %vm406_vm8, %v399_v40 }
  0x97   : > { %v362_v43 = vpop.permute.xlu1 %361  ;;  %v357_v44 = vpop.permute.xlu0 %356 }
  0x98   : > { %v403_v45 = vsel %vm395_vm13, %v325_v32, %v362_v43  ;;  %v402_v46 = vsel %vm394_vm14, %v324_v23, %v357_v44 }
  0x99   : > { %412 = vst.msk [vmem:[%s844_s8 + $0x28] sm:$0xff] %vm406_vm8, %v403_v45  ;;  %411 = vst.msk [vmem:[%s844_s8 + $0x20] sm:$0xff] %vm406_vm8, %v402_v46 }
  0x9b   : > { %v372_v47 = vpop.permute.xlu1 %371  ;;  %v367_v48 = vpop.permute.xlu0 %366 }
  0x9c   : > { %v405_v49 = vsel %vm397_vm15, %v325_v32, %v372_v47  ;;  %v404_v50 = vsel %vm396_vm0, %v324_v23, %v367_v48 }
  0x9d   : > { %414 = vst.msk [vmem:[%s844_s8 + $0x38] sm:$0xff] %vm406_vm8, %v405_v49  ;;  %413 = vst.msk [vmem:[%s844_s8 + $0x30] sm:$0xff] %vm406_vm8, %v404_v50 }
  0x9e   : > { %655 = shalt.err (!%p652_p5)
}
  0x9f   : > { %s656_s28 = scalar_lea.hbm %s865_s19, 1024  ;;  %s660_s4 = scalar_lea.hbm %s924_s3, 2048 }
  0xa0   : > { %p657_p6 = scmp.ne.s32.totalorder %s865_s19, %s656_s28  ;;  %p661_p10 = scmp.lt.u32.totalorder %s865_s19, %s924_s3 }
  0xa1   : > { %p662_p11 = scmp.lt.u32.totalorder %s660_s4, %s656_s28  ;;  %p664_p13 = scmp.lt.u32.totalorder %s656_s28, %s865_s19 }
  0xa2   : > { %p658_p7 = pnand %p657_p6, %p786_p4 }
  0xa3   : > { %p663_p12 = por %p662_p11, %p661_p10 }
  0xa4   : > { %p659_p9 = pneg %p658_p7 }
  0xa5   : > { %p665_p0 = por %p664_p13, %p663_p12 }
  0xa7   : > { %p666_p1 = pnand %p665_p0, %p659_p9 }
  0xa9   : > { %669 = shalt.err (!%p666_p1)
}
  0xaa   : > { %s724_s7 = smov 128   ;;  %s725_s8 = smov 8  }
  0xab   : > { %582 = dma.vmem_to_hbm [thread:$0]  (%p786_p4), %s867_s10, 1024, %s865_s19, %s875_s15, %s724_s7, %s724_s7, %s725_s8  }
  0xac PF: > { %p588_p2 = scmp.ge.s32.totalorder %s720_s17, 2  ;;  %s449_s9 = sand.u32 1, %s700_s12  }
  0xad   : > { %s450_s11 = scalar_lea.sflag [#allocation3], %s449_s9 }
  0xae   : > { %p585_p3 = pnand %p588_p2, %p793_p8 }
  0xb0   : > { %695 = dma.done.wait (!%p585_p3), %s450_s11, 1024  }
  0xb1   : > { %697 = vsyncadd (!%p585_p3), %s450_s11, 4294966272  ;;  %s16_s17 = sadd.s32 1, %s720_s17   ;;  %s927_s12 = smov %s704_s13 }
  0xb2   : > { %p13_p5 = scmp.ge.s32.totalorder %s16_s17, 4   ;;  %s928_s13 = smov %s708_s14 }
  0xb3   : > { %s929_s14 = smov %s799_s25  ;;  %s930_s15 = smov %s716_s16 }
  0xb4   : > { %s931_s16 = smov %s933_s20  ;;  %15 = sbr.rel (!%p13_p5) target bundleno = 4 (0x4), region = 73 }
  0xbb   :  { %455 = vsyncpa [#allocation3], 1 }
  0xbc   :  { %457 = vsyncpa [#allocation3 + $0x1], 1 }

</bundles_post_ra>
